<compile_context>
chip_gen: v7x
topology: tpu7x:2x2x1
jax: 0.10.0
libtpu: 0.0.40
codegen_flags: <defaults>
</compile_context>

<pallas_src>
import functools

import jax
import jax.numpy as jnp
from jax.experimental import pallas as pl
from jax.experimental.pallas import tpu as pltpu

_MIB = 2 ** 20


def _round_up(x, m):
    return ((x + m - 1) // m) * m


def _vmem_capacity_bytes():
    """Physical VMEM of the local chip; conservative (v7x-sized) fallback."""
    try:
        return int(pltpu.get_tpu_info().vmem_capacity_bytes)
    except Exception:
        return 64 * _MIB


def _pick_tile(dim, candidates, align):
    """Pick a tile size for one dimension.

    If the (alignment-rounded) dim fits inside the largest candidate, use the
    whole dim as a single tile (no padding, one step on that axis).  Otherwise
    pick the candidate that minimizes the total zero-padded extent, preferring
    larger tiles on ties (better fill of the 256x256 MXUs on v6e/v7x).
    """
    dim_aligned = _round_up(dim, align)
    if dim_aligned <= max(candidates):
        return dim_aligned
    best, best_padded = None, None
    for c in sorted(candidates, reverse=True):
        padded = _round_up(dim, c)
        if best_padded is None or padded < best_padded:
            best, best_padded = c, padded
    return best


# ---------------------------------------------------------------------------
# Small-matmul path: M, K, N all <= 128 -> pack several batches per grid step.
# ---------------------------------------------------------------------------
def _dot_product_small_kernel(x_ref, y_ref, o_ref, *, scale):
    # x_ref: (bt, M, K), y_ref: (bt, K, N), o_ref: (bt, M, N)
    acc = jnp.einsum(
        "bmk,bkn->bmn", x_ref[...], y_ref[...],
        preferred_element_type=jnp.float32,
    )
    if scale is not None:
        acc = acc * jnp.float32(scale)
    # NOTE: output last dim N may be < 128 lanes (masked stores).  A lane-dense
    # (bt, M*N) output slab would be faster but needs an in-kernel relayout;
    # kept simple/robust here.
    o_ref[...] = acc.astype(o_ref.dtype)


# ---------------------------------------------------------------------------
# Tiled path: per-batch 2-D tiles with an f32 accumulator over the K axis.
# ---------------------------------------------------------------------------
def _dot_product_tiled_kernel(x_ref, y_ref, o_ref, acc_ref, *, scale):
    # x_ref: (tm, tk), y_ref: (tk, tn), o_ref: (tm, tn), acc_ref: (tm, tn) f32
    k = pl.program_id(3)

    @pl.when(k == 0)
    def _():
        acc_ref[...] = jnp.zeros_like(acc_ref)

    acc_ref[...] += jnp.dot(
        x_ref[...], y_ref[...], preferred_element_type=jnp.float32
    )

    @pl.when(k == pl.num_programs(3) - 1)
    def _():
        acc = acc_ref[...]
        if scale is not None:
            # Scale applied once per output tile, in f32 (better numerics).
            acc = acc * jnp.float32(scale)
        o_ref[...] = acc.astype(o_ref.dtype)


def _dot_product_3d(x, y, scale, out_dtype):
    B, M, K = x.shape
    _, _, N = y.shape
    x_itemsize = jnp.dtype(x.dtype).itemsize
    y_itemsize = jnp.dtype(y.dtype).itemsize
    out_itemsize = jnp.dtype(out_dtype).itemsize

    cap = _vmem_capacity_bytes()
    big_vmem = cap >= 96 * _MIB
    # ~44 MiB on v7x (64 MiB physical, headroom for Mosaic scratch/semaphores),
    # ~100 MiB on v5e/v6e (128 MiB physical).
    vmem_limit = int(max(32 * _MIB, min(100 * _MIB, cap - 20 * _MIB)))

    # ----- tiny per-batch matmuls: batch-pack per grid step ------------------
    if M <= 128 and K <= 128 and N <= 128:
        per_batch_bytes = 2 * (M * K * x_itemsize
                               + K * N * y_itemsize
                               + M * N * out_itemsize)
        budget = (16 if big_vmem else 12) * _MIB
        bt = max(1, min(B, budget // max(per_batch_bytes, 1)))
        Bp = _round_up(B, bt)
        xp = x if Bp == B else jnp.pad(x, ((0, Bp - B), (0, 0), (0, 0)))
        yp = y if Bp == B else jnp.pad(y, ((0, Bp - B), (0, 0), (0, 0)))

        cost = pl.CostEstimate(
            flops=2 * B * M * N * K,
            bytes_accessed=int(x.size * x_itemsize + y.size * y_itemsize
                               + B * M * N * out_itemsize),
            transcendentals=0,
        )
        kernel = functools.partial(_dot_product_small_kernel, scale=scale)
        out = pl.pallas_call(
            kernel,
            out_shape=jax.ShapeDtypeStruct((Bp, M, N), out_dtype),
            grid_spec=pltpu.PrefetchScalarGridSpec(
                num_scalar_prefetch=0,
                grid=(Bp // bt,),
                in_specs=[
                    pl.BlockSpec((bt, M, K), lambda b: (b, 0, 0)),
                    pl.BlockSpec((bt, K, N), lambda b: (b, 0, 0)),
                ],
                out_specs=pl.BlockSpec((bt, M, N), lambda b: (b, 0, 0)),
            ),
            compiler_params=pltpu.CompilerParams(
                dimension_semantics=("parallel",),
                vmem_limit_bytes=vmem_limit,
            ),
            cost_estimate=cost,
        )(xp, yp)
        return out[:B] if Bp != B else out

    # ----- tiled path ---------------------------------------------------------
    # Tile candidates: no sub-128 fallbacks; bigger tiles where VMEM allows
    # (raises arithmetic intensity and cuts x/y re-reads on v5e/v6e).
    if big_vmem:
        tm_cands, tn_cands = (1024, 512, 256), (1024, 512, 256)
    else:
        tm_cands, tn_cands = (512, 256), (512, 256)
    tk_cands = (512, 256)

    tm = _pick_tile(M, tm_cands, 8)      # sublane-aligned
    tn = _pick_tile(N, tn_cands, 128)    # lane-aligned
    tk = _pick_tile(K, tk_cands, 128)    # lane-aligned

    # Wrapper-side zero padding (exact for matmul); padded rows/cols sliced off.
    Mp, Kp, Np = _round_up(M, tm), _round_up(K, tk), _round_up(N, tn)
    xp = x if (Mp == M and Kp == K) else jnp.pad(
        x, ((0, 0), (0, Mp - M), (0, Kp - K)))
    yp = y if (Kp == K and Np == N) else jnp.pad(
        y, ((0, 0), (0, Kp - K), (0, Np - N)))

    grid = (B, Mp // tm, Np // tn, Kp // tk)

    # Truthful byte count: x is streamed once per N-tile, y once per M-tile.
    cost = pl.CostEstimate(
        flops=2 * B * M * N * K,
        bytes_accessed=int(x.size * x_itemsize * (Np // tn)
                           + y.size * y_itemsize * (Mp // tm)
                           + B * M * N * out_itemsize),
        transcendentals=0,
    )

    kernel = functools.partial(_dot_product_tiled_kernel, scale=scale)
    out = pl.pallas_call(
        kernel,
        out_shape=jax.ShapeDtypeStruct((B, Mp, Np), out_dtype),
        grid_spec=pltpu.PrefetchScalarGridSpec(
            num_scalar_prefetch=0,
            grid=grid,
            in_specs=[
                pl.BlockSpec((pl.Squeezed(), tm, tk),
                             lambda b, i, j, k: (b, i, k)),
                pl.BlockSpec((pl.Squeezed(), tk, tn),
                             lambda b, i, j, k: (b, k, j)),
            ],
            out_specs=pl.BlockSpec((pl.Squeezed(), tm, tn),
                                   lambda b, i, j, k: (b, i, j)),
            scratch_shapes=[pltpu.VMEM((tm, tn), jnp.float32)],
        ),
        compiler_params=pltpu.CompilerParams(
            dimension_semantics=("parallel", "parallel", "parallel",
                                 "arbitrary"),
            vmem_limit_bytes=vmem_limit,
        ),
        cost_estimate=cost,
    )(xp, yp)

    if Mp != M or Np != N:
        out = out[:, :M, :N]
    return out


def dot_product(x, y, scale=None, matmul_dtype=None):
    """Pallas equivalent of DotProduct.forward: (x * scale) @ y.

    Supports 2-D operands or matching leading batch dims (flattened to one
    batch axis).  `matmul_dtype` (e.g. jnp.bfloat16) is an opt-in knob to run
    the MXU at reduced precision; accumulation stays f32 and the output keeps
    the promoted input dtype.
    """
    x = jnp.asarray(x)
    y = jnp.asarray(y)
    if x.ndim < 2 or y.ndim < 2:
        raise ValueError("dot_product expects operands with >= 2 dims")
    out_dtype = jnp.promote_types(x.dtype, y.dtype)

    if matmul_dtype is not None:
        x = x.astype(matmul_dtype)
        y = y.astype(matmul_dtype)

    squeeze_batch = False
    if x.ndim == 2 and y.ndim == 2:
        x, y = x[None], y[None]
        squeeze_batch = True
    if x.ndim != y.ndim or x.shape[:-2] != y.shape[:-2]:
        raise ValueError(f"batch dims must match: {x.shape} vs {y.shape}")
    if x.shape[-1] != y.shape[-2]:
        raise ValueError(f"contracting dims must match: {x.shape} @ {y.shape}")

    batch_shape = x.shape[:-2]
    B = 1
    for d in batch_shape:
        B *= d
    x3 = x.reshape(B, x.shape[-2], x.shape[-1])
    y3 = y.reshape(B, y.shape[-2], y.shape[-1])

    out = _dot_product_3d(x3, y3, scale, out_dtype)
    out = out.reshape(*batch_shape, out.shape[-2], out.shape[-1])
    if squeeze_batch:
        out = out[0]
    return out


if __name__ == "__main__":
    key = jax.random.PRNGKey(0)
    kx, ky, kx2, ky2, kx3, ky3 = jax.random.split(key, 6)

    # 1) Small attention-style shape (batch-packed small path).
    B, M, K, N = 2, 8, 32, 16
    scale = K ** -0.5
    x = jax.random.normal(kx, (B, M, K), dtype=jnp.float32)
    y = jax.random.normal(ky, (B, K, N), dtype=jnp.float32)
    out = jax.block_until_ready(dot_product(x, y, scale=scale))
    ref = jnp.matmul(x * scale, y)
    assert out.shape == (B, M, N)
    assert jnp.allclose(out, ref, atol=2e-2, rtol=2e-2), "small-path mismatch"

    # 2) Non-tile-aligned moderate shape (tiled path with M/N padding).
    B2, M2, K2, N2 = 2, 200, 384, 272
    x2 = jax.random.normal(kx2, (B2, M2, K2), dtype=jnp.float32)
    y2 = jax.random.normal(ky2, (B2, K2, N2), dtype=jnp.float32)
    out2 = jax.block_until_ready(dot_product(x2, y2, scale=0.125))
    ref2 = jnp.einsum("bmk,bkn->bmn", x2 * 0.125, y2,
                      precision=jax.lax.Precision.HIGHEST)
    assert out2.shape == (B2, M2, N2)
    assert jnp.allclose(out2, ref2, atol=2e-2, rtol=2e-2), "tiled-path mismatch"

    # 3) Multi-K-step shape (exercises the f32 accumulator + K zero-padding).
    B3, M3, K3, N3 = 1, 256, 640, 256
    x3 = jax.random.normal(kx3, (B3, M3, K3), dtype=jnp.float32)
    y3 = jax.random.normal(ky3, (B3, K3, N3), dtype=jnp.float32)
    out3 = jax.block_until_ready(dot_product(x3, y3, scale=None))
    ref3 = jnp.einsum("bmk,bkn->bmn", x3, y3,
                      precision=jax.lax.Precision.HIGHEST)
    assert out3.shape == (B3, M3, N3)
    assert jnp.allclose(out3, ref3, atol=2e-2, rtol=2e-2), "k-loop mismatch"

    print("KERNEL_OK")
</pallas_src>

<mosaic_0001>
module attributes {stable_mosaic.version = 11 : i64} {
  func.func @_dot_product_small_kernel(%arg0: i32, %arg1: memref<2x8x32xf32, #tpu.memory_space<vmem>>, %arg2: memref<2x32x16xf32, #tpu.memory_space<vmem>>, %arg3: memref<2x8x16xf32, #tpu.memory_space<vmem>>) attributes {dimension_semantics = [#tpu.dimension_semantics<parallel>], iteration_bounds = array<i64: 1>, scalar_prefetch = 0 : i64, scratch_operands = 0 : i64, tpu.core_type = #tpu.core_type<tc>, window_params = [{transform_indices = @transform_0, window_bounds = array<i64: 2, 8, 32>}, {transform_indices = @transform_1, window_bounds = array<i64: 2, 32, 16>}, {transform_indices = @transform_2, window_bounds = array<i64: 2, 8, 16>}]} {
    %c0 = arith.constant 0 : index
    %c0_0 = arith.constant 0 : index
    %c0_1 = arith.constant 0 : index
    %0 = vector.load %arg1[%c0, %c0_0, %c0_1] : memref<2x8x32xf32, #tpu.memory_space<vmem>>, vector<2x8x32xf32>
    %c0_2 = arith.constant 0 : index
    %c0_3 = arith.constant 0 : index
    %c0_4 = arith.constant 0 : index
    %1 = vector.load %arg2[%c0_2, %c0_3, %c0_4] : memref<2x32x16xf32, #tpu.memory_space<vmem>>, vector<2x32x16xf32>
    "tpu.trace_start"() <{level = 10 : i32, message = "bmk,bkn->bmn"}> : () -> ()
    %cst = arith.constant dense<0.000000e+00> : vector<2x8x16xf32>
    %2 = tpu.matmul %0, %1, %cst {dimension_numbers = #tpu.dot_dimension_numbers<[2], [1], [1], [2], [0, 0, 0, 1, 1, 2], [0], [0]>} : vector<2x8x32xf32>, vector<2x32x16xf32>, vector<2x8x16xf32> -> vector<2x8x16xf32>
    "tpu.trace_stop"() : () -> ()
    %cst_5 = arith.constant 0.176776692 : f32
    %3 = vector.broadcast %cst_5 : f32 to vector<2x8x16xf32>
    %4 = arith.mulf %2, %3 : vector<2x8x16xf32>
    %c0_6 = arith.constant 0 : index
    %c0_7 = arith.constant 0 : index
    %c0_8 = arith.constant 0 : index
    %5 = vector.load %arg3[%c0_6, %c0_7, %c0_8] : memref<2x8x16xf32, #tpu.memory_space<vmem>>, vector<2x8x16xf32>
    tpu.vector_store %arg3[%c0_6, %c0_7, %c0_8], %4 {strides = array<i32>} : memref<2x8x16xf32, #tpu.memory_space<vmem>>, vector<2x8x16xf32>,
    return
  }
  func.func @transform_0(%arg0: i32) -> (i32, i32, i32) {
    %c0_i32 = arith.constant 0 : i32
    %c0_i32_0 = arith.constant 0 : i32
    %c0_i32_1 = arith.constant 0 : i32
    return %arg0, %c0_i32, %c0_i32_0 : i32, i32, i32
  }
  func.func @transform_1(%arg0: i32) -> (i32, i32, i32) {
    %c0_i32 = arith.constant 0 : i32
    %c0_i32_0 = arith.constant 0 : i32
    %c0_i32_1 = arith.constant 0 : i32
    return %arg0, %c0_i32, %c0_i32_0 : i32, i32, i32
  }
  func.func @transform_2(%arg0: i32) -> (i32, i32, i32) {
    %c0_i32 = arith.constant 0 : i32
    %c0_i32_0 = arith.constant 0 : i32
    %c0_i32_1 = arith.constant 0 : i32
    return %arg0, %c0_i32, %c0_i32_0 : i32, i32, i32
  }
}

</mosaic_0001>

<bundles_post_ra>
// kernel: tpu_custom_call.1
= control target key start
LH: loop header
LB: loop body
LE: loop exit
PB: predicated region body
PF: predicated region fallthrough
CT: control target
= control target key end

     0   :  { %v266_v3 = vmov 0.0|0.0   ;;  %vm267_vm0 = vmmov 0   ;;  %v268_v11 = vmov 0.0   ;;  %s329_s0 = inlined_call_operand.vmem [shape: f32[2,8,32], index: 0, kind: input, shape index: {}]   ;;  %s330_s1 = inlined_call_operand.vmem [shape: f32[2,32,16], index: 1, kind: input, shape index: {}]   ;;  %s331_s2 = inlined_call_operand.hbm [shape: f32[2,8,16], index: 2, kind: output, shape index: {}]  }
   0x1   :  { %v14_v0 = vld [vmem:[%s330_s1] sm:$0xff]  ;;  %v15_v1 = vld [vmem:[%s330_s1 + $0x8] sm:$0xff]  ;;  %224 = vmatprep.subr.bf16.mxu0 %v266_v3  ;;  %230 = vmatprep.subr.bf16.mxu1 %v266_v3  ;;  %v16_v6 = vld [vmem:[%s330_s1 + $0x10] sm:$0xff] }
   0x2   :  { %v18_v2 = vld [vmem:[%s330_s1 + $0x20] sm:$0xff]  ;;  %v225_v4 = vpack.c.bf16 %v15_v1, %v14_v0  ;;  %v19_v5 = vld [vmem:[%s330_s1 + $0x28] sm:$0xff]  ;;  %v17_v7 = vld [vmem:[%s330_s1 + $0x18] sm:$0xff]  ;;  %210 = vmatprep.mubr.msk.f32.mxu0 %vm267_vm0, %v268_v11  ;;  %221 = vmatprep.mubr.msk.f32.mxu1 %vm267_vm0, %v268_v11 }
   0x3   :  { %v231_v8 = vpack.c.bf16 %v19_v5, %v18_v2  ;;  %v20_v9 = vld [vmem:[%s330_s1 + $0x30] sm:$0xff]  ;;  %v21_v10 = vld [vmem:[%s330_s1 + $0x38] sm:$0xff]  ;;  %v228_v12 = vpack.c.bf16 %v17_v7, %v16_v6 }
   0x4   :  { %226 = vmatpush3.bf16.msra.mxu0 %v225_v4 }
   0x5   :  { %7 = vsyncpa [#allocation3], 0  ;;  %232 = vmatpush3.bf16.msra.mxu1 %v231_v8  ;;  %227 = vmatprep.subr.bf16.mxu0 %v266_v3  ;;  %v234_v13 = vpack.c.bf16 %v21_v10, %v20_v9  ;;  %v12_v14 = vld [vmem:[%s329_s0] sm:$0xff]  ;;  %vm22_vm1 = vcmask 261120   ;;  %v13_v15 = vld [vmem:[%s329_s0 + $0x8] sm:$0xff]  ;;  %s269_s28 = smov [#allocation2]  }
   0x6   :  { %233 = vmatprep.subr.bf16.mxu1 %v266_v3  ;;  %s179_s29 = sshll.u32 %s269_s28, 4  ;;  %vm171_vm2 = vcmask 130048   ;;  %s180_s29 = int_to_ptr.vmem [resolvable:$true] %s179_s29 }
   0x7   :  { %s242_s30 = scalar_lea.vmem %s180_s29, 256  ;;  %p247_p1 = scmp.lt.s32.totalorder %s180_s29, %s180_s29 }
   0x8   :  { %229 = vmatpush3.bf16.msra.mxu0 %v228_v12  ;;  %p243_p0 = scmp.ne.s32.totalorder %s180_s29, %s242_s30  ;;  %p248_p2 = scmp.lt.s32.totalorder %s242_s30, %s242_s30 }
   0x9   :  { %235 = vmatpush3.bf16.msra.mxu1 %v234_v13 }
   0xa   :  { %p249_p3 = por %p248_p2, %p247_p1 }
   0xb   :  { %211 = vmatmul.mubr.msk.f32.vlgmr.msra.gmra.mrb[0].mxu0 %vm22_vm1, %v12_v14 }
   0xc   :  { %222 = vmatmul.mubr.msk.f32.vlgmr.msra.gmra.mrb[0].mxu1 %vm22_vm1, %v13_v15  ;;  %p250_p4 = pnand %p249_p3, %p243_p0 }
  0xde   :  { %v92_v16 = vpop.f32.mrb[0].mxu0 }
  0xdf   :  { %v169_v17 = vmul.f32 0.17677669, %v92_v16  ;;  %v165_v18 = vpop.f32.mrb[0].mxu1  ;;  %v212_v19 = vpop.f32.mrb[1].mxu0 }
  0xe0   :  { %v170_v20 = vmul.f32 0.17677669, %v165_v18  ;;  %v223_v21 = vpop.f32.mrb[1].mxu1 }
  0xe1   :  { %172 = vst.msk [vmem:[#allocation2] sm:$0xff] %vm171_vm2, %v169_v17 }
  0xe2   :  { %173 = vst.msk [vmem:[#allocation2 + $0x8] sm:$0xff] %vm171_vm2, %v170_v20 }
  0xe3   :  { %253 = shalt.err (!%p250_p4)
}
  0xe4   :  { %s254_s4 = scalar_lea.hbm %s331_s2, 256 }
  0xe5   :  { %p255_p5 = scmp.ne.s32.totalorder %s331_s2, %s254_s4  ;;  %p258_p6 = scmp.lt.u32.totalorder %s254_s4, %s331_s2 }
  0xe7   :  { %p260_p7 = pnand %p258_p6, %p255_p5 }
  0xe9   :  { %263 = shalt.err (!%p260_p7)
}
  0xea   :  { %s270_s9 = smov 128   ;;  %s271_s10 = smov 8  }
  0xeb   :  { %185 = dma.vmem_to_hbm [thread:$0]  %s180_s29, 256, %s331_s2, [#allocation3], %s270_s9, %s270_s9, %s271_s10  }
  0xec   :  { %264 = dma.done.wait [#allocation3], 256  }
  0xed   :  { %265 = vsyncadd [#allocation3], 4294967040 }
  0xee   :  { %189 = vsyncpa [#allocation3], 1 }

</bundles_post_ra>
